<compile_context>
chip_gen: v7x
topology: tpu7x:2x2x1
jax: 0.10.0
libtpu: 0.0.40
codegen_flags: <defaults>
</compile_context>

<pallas_src>
import jax
import jax.numpy as jnp
from jax.experimental import pallas as pl
from jax.experimental.pallas import tpu as pltpu

IN_CH = 36    # fixed by the module definition
OUT_CH = 1

_LANE = 128
_TARGET_BLOCK_BYTES = 6 * 1024 * 1024    # ~6 MiB of input per grid step
_VMEM_LIMIT_BYTES = 32 * 1024 * 1024     # covers 2x input buffers + intermediates on all gens


def _pick_tiles(B, L, itemsize):
    """Pick (BT, TL) so each grid step moves ~_TARGET_BLOCK_BYTES of input.

    Constraints honored:
      * TL is a multiple of 128 or equals L (lane-dense DMA; partial edge OK).
      * BT is a multiple of 8 or equals B (sublane-dense 2-D output block).
      * BT * IN_CH * TL * itemsize <= _TARGET_BLOCK_BYTES.
    """
    target = _TARGET_BLOCK_BYTES
    lane_bytes = IN_CH * itemsize              # bytes per length-position (all channels)

    # Batch tile: full B when small, else start at 8 (sublane-aligned).
    BT = B if B <= 8 else 8

    # Lane tile: as much of L as fits the budget with BT rows (multiple of 128),
    # or all of L when it fits.
    tl_budget = max(_LANE, target // (BT * lane_bytes))
    if L <= tl_budget:
        TL = L
        if B > 8:
            # Rows are cheap at this L: grow the batch tile (multiples of 8) to budget.
            rows = max(8, (target // (L * lane_bytes) // 8) * 8)
            BT = min(B, rows)
    else:
        TL = (tl_budget // _LANE) * _LANE
    return int(BT), int(TL)


def _conv1x1_kernel(x_ref, w_ref, b_ref, o_ref):
    # x_ref: (BT, 36, TL) VMEM  -- input tile (f32 or bf16)
    # w_ref: (1, 36, 1)   VMEM  -- f32 conv weight, grid-resident (constant index map)
    # b_ref: (1, 1)       SMEM  -- f32 conv bias scalar
    # o_ref: (BT, TL)     VMEM  -- sublane-dense output tile (input dtype)
    prod = x_ref[...] * w_ref[...]          # VPU; bf16 input promotes to f32
    acc = jnp.sum(prod, axis=1)             # channel (sublane) reduction -> (BT, TL) f32
    o_ref[...] = (acc + b_ref[0, 0]).astype(o_ref.dtype)


def semantic_regressor_forward(init_theta, semantic_guide, weight, bias):
    """Pallas implementation of Semantic_Regrssor.forward.

    init_theta     : unused by the PyTorch forward (kept for signature parity)
    semantic_guide : [B, 36, L] float32 or bfloat16 (bf16 recommended: halves HBM reads)
    weight         : [1, 36, 1] Conv1d weight (kept f32 inside the kernel)
    bias           : [1]        Conv1d bias
    returns        : [B, 1, L]  same dtype as semantic_guide
    """
    del init_theta
    B, C, L = semantic_guide.shape
    assert C == IN_CH

    x_dtype = semantic_guide.dtype
    itemsize = jnp.dtype(x_dtype).itemsize
    BT, TL = _pick_tiles(B, L, itemsize)

    w3d = weight.reshape(OUT_CH, IN_CH, 1).astype(jnp.float32)   # weight stays f32
    b2d = bias.reshape(1, 1).astype(jnp.float32)

    grid = (pl.cdiv(B, BT), pl.cdiv(L, TL))

    out2d = pl.pallas_call(
        _conv1x1_kernel,
        out_shape=jax.ShapeDtypeStruct((B, L), x_dtype),
        grid_spec=pltpu.PrefetchScalarGridSpec(
            num_scalar_prefetch=0,
            grid=grid,
            in_specs=[
                pl.BlockSpec((BT, IN_CH, TL), lambda b, l: (b, 0, l)),      # x tile
                pl.BlockSpec((OUT_CH, IN_CH, 1), lambda b, l: (0, 0, 0)),   # weight (resident)
                pl.BlockSpec((1, 1), lambda b, l: (0, 0),
                             memory_space=pltpu.MemorySpace.SMEM),          # bias scalar
            ],
            out_specs=pl.BlockSpec((BT, TL), lambda b, l: (b, l)),          # sublane-dense out
        ),
        compiler_params=pltpu.CompilerParams(
            # Both axes independent -> megacore split on multi-TC parts; harmless elsewhere.
            dimension_semantics=("parallel", "parallel"),
            vmem_limit_bytes=_VMEM_LIMIT_BYTES),
    )(semantic_guide, w3d, b2d)

    return out2d.reshape(B, OUT_CH, L)


def _reference(semantic_guide, weight, bias):
    # Pure-JAX reference of the same conv (1x1 Conv1d == channel matvec + bias).
    x32 = semantic_guide.astype(jnp.float32)
    w32 = weight[:, :, 0].astype(jnp.float32)
    return jnp.einsum("oc,bcl->bol", w32, x32) + bias.astype(jnp.float32)[None, :, None]


if __name__ == "__main__":
    key = jax.random.PRNGKey(0)
    k_x, k_t, k_w, k_b, k_x2, k_x3 = jax.random.split(key, 6)

    # Deterministic synthetic Conv1d(36 -> 1, kernel_size=1) parameters.
    weight = jax.random.normal(k_w, (OUT_CH, IN_CH, 1), dtype=jnp.float32) * 0.1
    bias = jax.random.normal(k_b, (OUT_CH,), dtype=jnp.float32) * 0.1

    # --- case 1: small module-spec shapes (B=2, N=36, dim=16), single grid step ---
    B, L = 2, 16
    semantic_guide = jax.random.normal(k_x, (B, IN_CH, L), dtype=jnp.float32)
    init_theta = jax.random.normal(k_t, (B, 24 * 6), dtype=jnp.float32)  # unused, parity only
    out = jax.block_until_ready(
        semantic_regressor_forward(init_theta, semantic_guide, weight, bias))
    ref = _reference(semantic_guide, weight, bias)
    assert out.shape == (B, OUT_CH, L)
    assert jnp.allclose(out, ref, atol=1e-5, rtol=1e-5), "mismatch vs reference (small f32)"

    # --- case 2: long, non-128-multiple L -> lane tiling with a partial edge block ---
    B2, L2 = 2, 50000            # -> BT=2, TL=21760, grid=(1, 3), masked edge of 6480
    x_big = jax.random.normal(k_x2, (B2, IN_CH, L2), dtype=jnp.float32)
    out_big = jax.block_until_ready(
        semantic_regressor_forward(None, x_big, weight, bias))
    ref_big = _reference(x_big, weight, bias)
    assert out_big.shape == (B2, OUT_CH, L2)
    assert jnp.allclose(out_big, ref_big, atol=1e-4, rtol=1e-4), \
        "mismatch vs reference (tiled f32, partial lane edge)"

    # --- case 3: bf16 activations, B not a multiple of the batch tile (partial edge) ---
    B3, L3 = 25, 8192            # -> BT=8, TL=8192, grid=(4, 1), masked edge of 1 row
    x_bf16 = jax.random.normal(k_x3, (B3, IN_CH, L3), dtype=jnp.float32).astype(jnp.bfloat16)
    out_bf16 = jax.block_until_ready(
        semantic_regressor_forward(None, x_bf16, weight, bias))
    ref_bf16 = _reference(x_bf16, weight, bias)
    assert out_bf16.dtype == jnp.bfloat16
    assert jnp.allclose(out_bf16.astype(jnp.float32), ref_bf16, atol=1e-2, rtol=2e-2), \
        "mismatch vs reference (bf16, partial batch edge)"

    print("KERNEL_OK")
</pallas_src>

<mosaic_0001>
module attributes {stable_mosaic.version = 11 : i64} {
  func.func @_conv1x1_kernel(%arg0: i32, %arg1: i32, %arg2: memref<2x36x16xf32, #tpu.memory_space<vmem>>, %arg3: memref<1x36x1xf32, #tpu.memory_space<vmem>>, %arg4: memref<1x1xf32, #tpu.memory_space<smem>>, %arg5: memref<2x16xf32, #tpu.memory_space<vmem>>) attributes {dimension_semantics = [#tpu.dimension_semantics<parallel>, #tpu.dimension_semantics<parallel>], iteration_bounds = array<i64: 1, 1>, scalar_prefetch = 0 : i64, scratch_operands = 0 : i64, tpu.core_type = #tpu.core_type<tc>, window_params = [{transform_indices = @transform_0, window_bounds = array<i64: 2, 36, 16>}, {pipeline_mode = #tpu.pipeline_mode<synchronous>, transform_indices = @transform_1, window_bounds = array<i64: 1, 36, 1>}, {transform_indices = @transform_2, window_bounds = array<i64: 1, 1>}, {transform_indices = @transform_3, window_bounds = array<i64: 2, 16>}]} {
    %c0 = arith.constant 0 : index
    %c0_0 = arith.constant 0 : index
    %c0_1 = arith.constant 0 : index
    %0 = vector.load %arg2[%c0, %c0_0, %c0_1] : memref<2x36x16xf32, #tpu.memory_space<vmem>>, vector<2x36x16xf32>
    %c0_2 = arith.constant 0 : index
    %c0_3 = arith.constant 0 : index
    %c0_4 = arith.constant 0 : index
    %1 = vector.load %arg3[%c0_2, %c0_3, %c0_4] : memref<1x36x1xf32, #tpu.memory_space<vmem>>, vector<1x36x1xf32>
    %2 = vector.broadcast %1 : vector<1x36x1xf32> to vector<2x36x16xf32>
    %3 = arith.mulf %0, %2 : vector<2x36x16xf32>
    %cst = arith.constant dense<0.000000e+00> : vector<2x16xf32>
    %4 = vector.multi_reduction <add>, %3, %cst [1] : vector<2x36x16xf32> to vector<2x16xf32>
    %c0_5 = arith.constant 0 : index
    %c0_6 = arith.constant 0 : index
    %5 = memref.load %arg4[%c0_5, %c0_6] : memref<1x1xf32, #tpu.memory_space<smem>>
    %6 = vector.broadcast %5 : f32 to vector<2x16xf32>
    %7 = arith.addf %4, %6 : vector<2x16xf32>
    %c0_7 = arith.constant 0 : index
    %c0_8 = arith.constant 0 : index
    %8 = vector.load %arg5[%c0_7, %c0_8] : memref<2x16xf32, #tpu.memory_space<vmem>>, vector<2x16xf32>
    tpu.vector_store %arg5[%c0_7, %c0_8], %7 {strides = array<i32>} : memref<2x16xf32, #tpu.memory_space<vmem>>, vector<2x16xf32>,
    return
  }
  func.func @transform_0(%arg0: i32, %arg1: i32) -> (i32, i32, i32) {
    %c0_i32 = arith.constant 0 : i32
    %c0_i32_0 = arith.constant 0 : i32
    return %arg0, %c0_i32, %arg1 : i32, i32, i32
  }
  func.func @transform_1(%arg0: i32, %arg1: i32) -> (i32, i32, i32) {
    %c0_i32 = arith.constant 0 : i32
    %c0_i32_0 = arith.constant 0 : i32
    %c0_i32_1 = arith.constant 0 : i32
    %c0_i32_2 = arith.constant 0 : i32
    return %c0_i32, %c0_i32_0, %c0_i32_1 : i32, i32, i32
  }
  func.func @transform_2(%arg0: i32, %arg1: i32) -> (i32, i32) {
    %c0_i32 = arith.constant 0 : i32
    %c0_i32_0 = arith.constant 0 : i32
    %c0_i32_1 = arith.constant 0 : i32
    return %c0_i32, %c0_i32_0 : i32, i32
  }
  func.func @transform_3(%arg0: i32, %arg1: i32) -> (i32, i32) {
    %c0_i32 = arith.constant 0 : i32
    return %arg0, %arg1 : i32, i32
  }
}

</mosaic_0001>

<bundles_post_ra>
// kernel: tpu_custom_call.1
= control target key start
LH: loop header
LB: loop body
LE: loop exit
PB: predicated region body
PF: predicated region fallthrough
CT: control target
= control target key end

     0   :  { %v151_v2 = vmov 0   ;;  %s241_s0 = inlined_call_operand.vmem [shape: f32[2,36,16], index: 0, kind: input, shape index: {}]   ;;  %s242_s1 = inlined_call_operand.vmem [shape: f32[1,36,1], index: 1, kind: input, shape index: {}]   ;;  %s243_s2 = inlined_call_operand.<no memory space> [shape: f32[1,1], index: 2, kind: input, shape index: {}]   ;;  %s244_s3 = inlined_call_operand.hbm [shape: f32[2,16], index: 3, kind: output, shape index: {}]  }
   0x1   :  { %v28_v0 = vld [vmem:[%s242_s1 + $0x10] sm:$0xff]  ;;  %v26_v1 = vld [vmem:[%s242_s1] sm:$0xff]  ;;  %126 = vset.pattern.permute.xlu1 %v151_v2  ;;  %125 = vset.pattern.permute.xlu0 %v151_v2  ;;  %v29_v3 = vld [vmem:[%s242_s1 + $0x18] sm:$0xff] }
   0x2   :  { %43 = vperm.xlu1 %126, %v28_v0   ;;  %33 = vperm.xlu0 %125, %v26_v1   ;;  %v27_v4 = vld [vmem:[%s242_s1 + $0x8] sm:$0xff] }
   0x3   :  { %9 = vsyncpa [#allocation4], 0  ;;  %v30_v5 = vld [vmem:[%s242_s1 + $0x20] sm:$0xf]  ;;  %v21_v7 = vld [vmem:[%s241_s0 + $0x28] sm:$0xff]  ;;  %vm66_vm0 = vcmask 130048   ;;  %v99_v59 = vstv %s243_s2 }
   0x4   :  { %v16_v6 = vld [vmem:[%s241_s0] sm:$0xff]  ;;  %v18_v10 = vld [vmem:[%s241_s0 + $0x10] sm:$0xff]  ;;  %v23_v11 = vld [vmem:[%s241_s0 + $0x38] sm:$0xff]  ;;  %vm74_vm1 = vcmask 125952   ;;  %s152_s15 = smov [#allocation3]   ;;  %vm104_vm2 = vcmask 1041409  }
   0x5   :  { %v17_v14 = vld [vmem:[%s241_s0 + $0x8] sm:$0xff]  ;;  %v22_v15 = vld [vmem:[%s241_s0 + $0x30] sm:$0xff]  ;;  %v19_v17 = vld [vmem:[%s241_s0 + $0x18] sm:$0xff]  ;;  %s115_s16 = sshll.u32 %s152_s15, 4  ;;  %vm107_vm3 = vcmask 123904   ;;  %s116_s16 = int_to_ptr.vmem [resolvable:$true] %s115_s16 }
   0x6   :  { %48 = vperm.xlu1 %126, %v29_v3   ;;  %38 = vperm.xlu0 %125, %v27_v4   ;;  %v24_v18 = vld [vmem:[%s241_s0 + $0x40] sm:$0xff]  ;;  %v25_v27 = vld [vmem:[%s241_s0 + $0x48] sm:$0xf]  ;;  %s127_s17 = scalar_lea.vmem %s116_s16, 32  ;;  %p132_p1 = scmp.lt.s32.totalorder %s116_s16, %s116_s16 }
   0x7   :  { %v20_v26 = vld [vmem:[%s241_s0 + $0x20] sm:$0xf]  ;;  %p128_p0 = scmp.ne.s32.totalorder %s116_s16, %s127_s17  ;;  %p133_p2 = scmp.lt.s32.totalorder %s127_s17, %s127_s17 }
   0x9   :  { %p134_p3 = por %p133_p2, %p132_p1 }
   0xa   :  { %53 = vperm.xlu0 %125, %v30_v5  }
   0xb   :  { %p135_p4 = pnand %p134_p3, %p128_p0 }
  0x81   :  { %v44_v8 = vpop.permute.xlu1 %43  ;;  %v34_v9 = vpop.permute.xlu0 %33 }
  0x82   :  { %v56_v12 = vmul.f32 %v34_v9, %v16_v6  ;;  %v61_v13 = vmul.f32 %v34_v9, %v21_v7  ;;  %v58_v20 = vmul.f32 %v44_v8, %v18_v10  ;;  %v63_v21 = vmul.f32 %v44_v8, %v23_v11 }
  0x84   :  { %v67_v24 = vsel %vm66_vm0, %v56_v12, 0.0  ;;  %v83_v25 = vsel %vm66_vm0, %v61_v13, 0.0  ;;  %v70_v35 = vsel %vm66_vm0, %v58_v20, 0.0  ;;  %v86_v36 = vsel %vm66_vm0, %v63_v21, 0.0 }
  0x85   :  { %v49_v16 = vpop.permute.xlu1 %48  ;;  %v39_v19 = vpop.permute.xlu0 %38 }
  0x86   :  { %v57_v22 = vmul.f32 %v39_v19, %v17_v14  ;;  %v62_v23 = vmul.f32 %v39_v19, %v22_v15  ;;  %v59_v28 = vmul.f32 %v49_v16, %v19_v17  ;;  %v64_v29 = vmul.f32 %v49_v16, %v24_v18 }
  0x88   :  { %v68_v30 = vsel %vm66_vm0, %v57_v22, 0.0  ;;  %v84_v31 = vsel %vm66_vm0, %v62_v23, 0.0  ;;  %v72_v41 = vsel %vm66_vm0, %v59_v28, 0.0  ;;  %v88_v42 = vsel %vm66_vm0, %v64_v29, 0.0 }
  0x89   :  { %v69_v32 = vadd.f32 %v68_v30, %v67_v24  ;;  %v85_v33 = vadd.f32 %v84_v31, %v83_v25  ;;  %v54_v34 = vpop.permute.xlu0 %53 }
  0x8a   :  { %v60_v37 = vmul.f32 %v54_v34, %v20_v26  ;;  %v65_v38 = vmul.f32 %v54_v34, %v25_v27 }
  0x8b   :  { %v71_v39 = vadd.f32 %v70_v35, %v69_v32  ;;  %v87_v40 = vadd.f32 %v86_v36, %v85_v33 }
  0x8c   :  { %v75_v45 = vsel %vm74_vm1, %v60_v37, 0.0  ;;  %v90_v46 = vsel %vm74_vm1, %v65_v38, 0.0 }
  0x8d   :  { %v73_v43 = vadd.f32 %v72_v41, %v71_v39  ;;  %v89_v44 = vadd.f32 %v88_v42, %v87_v40 }
  0x8f   :  { %v76_v47 = vadd.f32 %v75_v45, %v73_v43  ;;  %v91_v48 = vadd.f32 %v90_v46, %v89_v44 }
  0x91   :  { %v77_v49 = vrot.slane %v76_v47, 4  ;;  %v92_v50 = vrot.slane %v91_v48, 4 }
  0x93   :  { %v78_v51 = vadd.f32 %v77_v49, %v76_v47  ;;  %v93_v52 = vadd.f32 %v92_v50, %v91_v48 }
  0x95   :  { %v79_v53 = vrot.slane %v78_v51, 2  ;;  %v94_v54 = vrot.slane %v93_v52, 2 }
  0x97   :  { %v80_v55 = vadd.f32 %v79_v53, %v78_v51  ;;  %v95_v56 = vadd.f32 %v94_v54, %v93_v52 }
  0x99   :  { %v81_v57 = vrot.slane %v80_v55, 1  ;;  %v96_v58 = vrot.slane %v95_v56, 1 }
  0x9b   :  { %v82_v60 = vadd.f32 %v81_v57, %v80_v55  ;;  %v97_v61 = vadd.f32 %v96_v58, %v95_v56 }
  0x9d   :  { %v100_v62 = vadd.f32 %v99_v59, %v82_v60  ;;  %v101_v63 = vadd.f32 %v99_v59, %v97_v61 }
  0x9f   :  { %v105_v0 = vsel %vm104_vm2, %v101_v63, %v100_v62 }
  0xa0   :  { %108 = vst.msk [vmem:[#allocation3] sm:$0x3] %vm107_vm3, %v105_v0 }
  0xa1   :  { %138 = shalt.err (!%p135_p4)
}
  0xa2   :  { %s139_s19 = scalar_lea.hbm %s244_s3, 32 }
  0xa3   :  { %p140_p5 = scmp.ne.s32.totalorder %s244_s3, %s139_s19  ;;  %p143_p6 = scmp.lt.u32.totalorder %s139_s19, %s244_s3 }
  0xa5   :  { %p145_p7 = pnand %p143_p6, %p140_p5 }
  0xa7   :  { %148 = shalt.err (!%p145_p7)
}
  0xa8   :  { %118 = dma.vmem_to_hbm [thread:$0]  %s116_s16, 32, %s244_s3, [#allocation4]  }
  0xa9   :  { %149 = dma.done.wait [#allocation4], 32  }
  0xaa   :  { %150 = vsyncadd [#allocation4], 4294967264 }
  0xab   :  { %122 = vsyncpa [#allocation4], 1 }

</bundles_post_ra>
